<compile_context>
chip_gen: v6e
topology: v6e:2x2x1
jax: 0.10.0
libtpu: 0.0.40
codegen_flags: <defaults>
</compile_context>

<pallas_src>
import functools
import math

import jax
import jax.numpy as jnp
from jax.experimental import pallas as pl
from jax.experimental.pallas import tpu as pltpu

_MASK_VALUE = -1e30  # large finite negative; exp() underflows to 0, no NaN rows


def _pick_block(dim, preferred, align):
    """Largest block <= preferred that divides `dim` and is a multiple of
    `align` (TPU lane/sublane tiling constraint); falls back to the full dim."""
    preferred = min(preferred, dim)
    start = (preferred // align) * align
    for cand in range(start, 0, -align):
        if dim % cand == 0:
            return cand
    return dim


# -----------------------------------------------------------------------------
# Pallas kernels
# -----------------------------------------------------------------------------
def _layernorm_kernel(x_ref, g_ref, b_ref, o_ref, *, eps):
    # x: (tm, D); g, b: (1, D)  -- statistics in f32
    x = x_ref[...].astype(jnp.float32)
    mean = jnp.mean(x, axis=-1, keepdims=True)
    var = jnp.mean((x - mean) ** 2, axis=-1, keepdims=True)
    y = (x - mean) * jax.lax.rsqrt(var + eps)
    o_ref[...] = (g_ref[...].astype(jnp.float32) * y
                  + b_ref[...].astype(jnp.float32)).astype(o_ref.dtype)


def _linear_kernel(*refs, act, has_residual, w_transposed):
    # refs: x, w, b, [residual], out, acc
    if has_residual:
        x_ref, w_ref, b_ref, r_ref, o_ref, acc_ref = refs
    else:
        x_ref, w_ref, b_ref, o_ref, acc_ref = refs
        r_ref = None

    k = pl.program_id(2)
    nk = pl.num_programs(2)

    @pl.when(k == 0)
    def _init():
        acc_ref[...] = jnp.zeros_like(acc_ref)

    if w_transposed:
        # w block is (tn, tk) of a (d_out, d_in) matrix -> contract dim 1 of both
        acc_ref[...] += jax.lax.dot_general(
            x_ref[...], w_ref[...],
            dimension_numbers=(((1,), (1,)), ((), ())),
            preferred_element_type=jnp.float32)
    else:
        acc_ref[...] += jnp.dot(x_ref[...], w_ref[...],
                                preferred_element_type=jnp.float32)

    @pl.when(k == nk - 1)
    def _finalize():
        y = acc_ref[...] + b_ref[...].astype(jnp.float32)
        if act == "gelu":
            # exact (erf-based) GELU, matching torch.nn.GELU() default
            y = 0.5 * y * (1.0 + jax.lax.erf(y * jnp.float32(1.0 / math.sqrt(2.0))))
        elif act == "relu":
            y = jnp.maximum(y, 0.0)
        if has_residual:
            y = y + r_ref[...].astype(jnp.float32)
        o_ref[...] = y.astype(o_ref.dtype)


def _flash_attn_kernel(q_ref, k_ref, v_ref, o_ref, m_ref, l_ref, acc_ref,
                       *, scale, block_q, block_kv):
    # blocks: q (1, tq, dk); k/v (1, tkv, dk); out (1, tq, dk)
    qi = pl.program_id(1)
    ki = pl.program_id(2)
    nk = pl.num_programs(2)

    @pl.when(ki == 0)
    def _init():
        m_ref[...] = jnp.full_like(m_ref, -jnp.inf)
        l_ref[...] = jnp.zeros_like(l_ref)
        acc_ref[...] = jnp.zeros_like(acc_ref)

    q_start = qi * block_q
    k_start = ki * block_kv

    # Skip KV tiles that lie entirely above the causal diagonal.
    @pl.when(k_start <= q_start + (block_q - 1))
    def _compute():
        q = q_ref[0].astype(jnp.float32)          # (tq, dk)
        kk = k_ref[0].astype(jnp.float32)         # (tkv, dk)
        v = v_ref[0].astype(jnp.float32)          # (tkv, dk)
        s = jax.lax.dot_general(
            q, kk, dimension_numbers=(((1,), (1,)), ((), ())),
            preferred_element_type=jnp.float32) * scale          # (tq, tkv)
        row = q_start + jax.lax.broadcasted_iota(jnp.int32, s.shape, 0)
        col = k_start + jax.lax.broadcasted_iota(jnp.int32, s.shape, 1)
        s = jnp.where(row >= col, s, _MASK_VALUE)                # causal mask
        m_prev = m_ref[...]                                      # (tq, 1)
        m_new = jnp.maximum(m_prev, jnp.max(s, axis=-1, keepdims=True))
        alpha = jnp.exp(m_prev - m_new)
        p = jnp.exp(s - m_new)
        l_ref[...] = alpha * l_ref[...] + jnp.sum(p, axis=-1, keepdims=True)
        acc_ref[...] = alpha * acc_ref[...] + jnp.dot(
            p, v, preferred_element_type=jnp.float32)
        m_ref[...] = m_new

    @pl.when(ki == nk - 1)
    def _finalize():
        o_ref[0] = (acc_ref[...] / l_ref[...]).astype(o_ref.dtype)


# -----------------------------------------------------------------------------
# Pallas wrappers
# -----------------------------------------------------------------------------
def pallas_layernorm(x, gamma, beta, eps, block_m=512):
    orig_shape = x.shape
    d = orig_shape[-1]
    x2 = x.reshape(-1, d)
    m = x2.shape[0]
    tm = _pick_block(m, block_m, 8)
    out = pl.pallas_call(
        functools.partial(_layernorm_kernel, eps=eps),
        out_shape=jax.ShapeDtypeStruct((m, d), x.dtype),
        grid=(m // tm,),
        in_specs=[
            pl.BlockSpec((tm, d), lambda i: (i, 0)),
            pl.BlockSpec((1, d), lambda i: (0, 0)),
            pl.BlockSpec((1, d), lambda i: (0, 0)),
        ],
        out_specs=pl.BlockSpec((tm, d), lambda i: (i, 0)),
        compiler_params=pltpu.CompilerParams(dimension_semantics=("parallel",)),
    )(x2, gamma.reshape(1, d), beta.reshape(1, d))
    return out.reshape(orig_shape)


def pallas_linear(x, w, b, act=None, residual=None, w_transposed=False,
                  block_m=256, block_n=256, block_k=512):
    """y = x @ W (+ b, optional activation, optional fused residual add).

    If w_transposed, W is stored as (d_out, d_in) and contracted on its
    second dim (used for the tied-embedding logits head; avoids an HBM .T)."""
    orig_shape = x.shape
    d_in = orig_shape[-1]
    if w_transposed:
        d_out, d_in_w = w.shape
    else:
        d_in_w, d_out = w.shape
    assert d_in_w == d_in
    x2 = x.reshape(-1, d_in)
    m = x2.shape[0]

    tm = _pick_block(m, block_m, 8)
    tn = _pick_block(d_out, block_n, 128)
    tk = _pick_block(d_in, block_k, 128)
    grid = (m // tm, d_out // tn, d_in // tk)

    in_specs = [pl.BlockSpec((tm, tk), lambda i, j, k: (i, k))]
    if w_transposed:
        in_specs.append(pl.BlockSpec((tn, tk), lambda i, j, k: (j, k)))
    else:
        in_specs.append(pl.BlockSpec((tk, tn), lambda i, j, k: (k, j)))
    in_specs.append(pl.BlockSpec((1, tn), lambda i, j, k: (0, j)))

    args = [x2, w, b.reshape(1, d_out)]
    has_residual = residual is not None
    if has_residual:
        in_specs.append(pl.BlockSpec((tm, tn), lambda i, j, k: (i, j)))
        args.append(residual.reshape(-1, d_out))

    bytes_el = x.dtype.itemsize
    cost = pl.CostEstimate(
        flops=2 * m * d_out * d_in,
        transcendentals=(m * d_out) if act == "gelu" else 0,
        bytes_accessed=(m * d_in + d_in * d_out + m * d_out) * bytes_el)

    out = pl.pallas_call(
        functools.partial(_linear_kernel, act=act,
                          has_residual=has_residual,
                          w_transposed=w_transposed),
        out_shape=jax.ShapeDtypeStruct((m, d_out), x.dtype),
        grid=grid,
        in_specs=in_specs,
        out_specs=pl.BlockSpec((tm, tn), lambda i, j, k: (i, j)),
        scratch_shapes=[pltpu.VMEM((tm, tn), jnp.float32)],
        compiler_params=pltpu.CompilerParams(
            dimension_semantics=("parallel", "parallel", "arbitrary")),
        cost_estimate=cost,
    )(*args)
    return out.reshape(orig_shape[:-1] + (d_out,))


def pallas_causal_flash_attention(q, k, v, block_q=128, block_kv=128):
    # q, k, v: (B*H, S, dk)
    bh, seq, dk = q.shape
    tq = _pick_block(seq, block_q, 8)
    tkv = _pick_block(seq, block_kv, 8)
    grid = (bh, seq // tq, seq // tkv)
    q_spec = pl.BlockSpec((1, tq, dk), lambda b, qi, ki: (b, qi, 0))
    kv_spec = pl.BlockSpec((1, tkv, dk), lambda b, qi, ki: (b, ki, 0))
    return pl.pallas_call(
        functools.partial(_flash_attn_kernel, scale=1.0 / math.sqrt(dk),
                          block_q=tq, block_kv=tkv),
        out_shape=jax.ShapeDtypeStruct((bh, seq, dk), q.dtype),
        grid=grid,
        in_specs=[q_spec, kv_spec, kv_spec],
        out_specs=q_spec,
        scratch_shapes=[
            pltpu.VMEM((tq, 1), jnp.float32),    # running max
            pltpu.VMEM((tq, 1), jnp.float32),    # running denom
            pltpu.VMEM((tq, dk), jnp.float32),   # output accumulator
        ],
        compiler_params=pltpu.CompilerParams(
            dimension_semantics=("parallel", "parallel", "arbitrary")),
    )(q, k, v)


# -----------------------------------------------------------------------------
# Parameter initialization (deterministic, mirrors GPT._init_model_weights)
# -----------------------------------------------------------------------------
def init_gpt_params(key, *, vocab_size, seq_length, d_model, num_layers,
                    num_heads, d_ff, std=0.02):
    proj_std = std / math.sqrt(2 * num_layers)   # rl_projection scaling

    def normal(k, shape, s):
        return jax.random.normal(k, shape, dtype=jnp.float32) * s

    keys = jax.random.split(key, 2 + num_layers)
    params = {
        "token_emb": normal(keys[0], (vocab_size, d_model), std),
        "pos_emb": normal(keys[1], (seq_length, d_model), std),
        "lnf_g": jnp.ones((d_model,), jnp.float32),
        "lnf_b": jnp.zeros((d_model,), jnp.float32),
        "last_bias": jnp.zeros((vocab_size,), jnp.float32),
        "layers": [],
    }
    for li in range(num_layers):
        lk = jax.random.split(keys[2 + li], 4)
        layer = {
            "ln1_g": jnp.ones((d_model,), jnp.float32),
            "ln1_b": jnp.zeros((d_model,), jnp.float32),
            # fused Q,K,V projection: [wq | wk | wv] along d_out
            "w_qkv": normal(lk[0], (d_model, 3 * d_model), std),
            "b_qkv": jnp.zeros((3 * d_model,), jnp.float32),
            "wo": normal(lk[1], (d_model, d_model), proj_std),   # attn rl_projection
            "bo": jnp.zeros((d_model,), jnp.float32),
            "ln2_g": jnp.ones((d_model,), jnp.float32),
            "ln2_b": jnp.zeros((d_model,), jnp.float32),
            "w1": normal(lk[2], (d_model, d_ff), std),
            "b1": jnp.zeros((d_ff,), jnp.float32),
            "w2": normal(lk[3], (d_ff, d_model), proj_std),      # ffn rl_projection
            "b2": jnp.zeros((d_model,), jnp.float32),
        }
        params["layers"].append(layer)
    return params


# -----------------------------------------------------------------------------
# GPT forward pass (glue in JAX, compute in Pallas kernels)
# -----------------------------------------------------------------------------
def gpt_forward(params, ids, *, num_heads, eps=1e-7):
    bsz, seq = ids.shape
    d_model = params["token_emb"].shape[1]
    dk = d_model // num_heads

    tok = params["token_emb"][ids]                 # (B, S, D) embedding gather
    pos = params["pos_emb"][:seq]                  # (S, D)
    x = tok + pos[None, :, :]
    # TODO(synk): dropout layers are identity here (deterministic / eval-mode).

    for layer in params["layers"]:
        # --- causal multi-head self-attention block ---
        h = pallas_layernorm(x, layer["ln1_g"], layer["ln1_b"], eps)
        qkv = pallas_linear(h, layer["w_qkv"], layer["b_qkv"])   # (B, S, 3D)
        qkv = qkv.reshape(bsz, seq, 3, num_heads, dk)
        qkv = qkv.transpose(2, 0, 3, 1, 4).reshape(3, bsz * num_heads, seq, dk)
        q, k, v = qkv[0], qkv[1], qkv[2]                         # (B*H, S, dk)
        y = pallas_causal_flash_attention(q, k, v)               # (B*H, S, dk)
        y = y.reshape(bsz, num_heads, seq, dk).transpose(0, 2, 1, 3)
        y = y.reshape(bsz, seq, d_model)
        # output projection with fused residual add: x = x + y @ wo + bo
        x = pallas_linear(y, layer["wo"], layer["bo"], residual=x)

        # --- position-wise feed-forward block ---
        h = pallas_layernorm(x, layer["ln2_g"], layer["ln2_b"], eps)
        f = pallas_linear(h, layer["w1"], layer["b1"], act="gelu")
        # second projection with fused residual add: x = x + f @ w2 + b2
        x = pallas_linear(f, layer["w2"], layer["b2"], residual=x)

    x = pallas_layernorm(x, params["lnf_g"], params["lnf_b"], eps)
    # tied weights: last_linear.weight == token_embedding.weight -> x @ E^T + b
    # (E is passed as-is and contracted on its second dim; no HBM transpose)
    logits = pallas_linear(x, params["token_emb"], params["last_bias"],
                           w_transposed=True)
    return logits


# -----------------------------------------------------------------------------
# Main
# -----------------------------------------------------------------------------
if __name__ == "__main__":
    # small GPTConfig-consistent shapes
    VOCAB = 512
    SEQ_LENGTH = 16     # max_seq_length / positional table size
    D_MODEL = 64
    NUM_LAYERS = 2
    NUM_HEADS = 4
    D_FF = 128
    EPS = 1e-7

    BATCH = 2
    SEQ = 8             # input sequence length (<= SEQ_LENGTH)

    root = jax.random.PRNGKey(0)
    pkey, ikey = jax.random.split(root)

    params = init_gpt_params(
        pkey, vocab_size=VOCAB, seq_length=SEQ_LENGTH, d_model=D_MODEL,
        num_layers=NUM_LAYERS, num_heads=NUM_HEADS, d_ff=D_FF)

    ids = jax.random.randint(ikey, (BATCH, SEQ), 0, VOCAB, dtype=jnp.int32)

    logits = gpt_forward(params, ids, num_heads=NUM_HEADS, eps=EPS)
    jax.block_until_ready(logits)

    assert logits.shape == (BATCH, SEQ, VOCAB), logits.shape
    assert logits.dtype == jnp.float32
    print("KERNEL_OK")
</pallas_src>

<mosaic_0001>
module attributes {stable_mosaic.version = 11 : i64} {
  func.func @_layernorm_kernel(%arg0: i32, %arg1: memref<16x64xf32, #tpu.memory_space<vmem>>, %arg2: memref<1x64xf32, #tpu.memory_space<vmem>>, %arg3: memref<1x64xf32, #tpu.memory_space<vmem>>, %arg4: memref<16x64xf32, #tpu.memory_space<vmem>>) attributes {dimension_semantics = [#tpu.dimension_semantics<parallel>], iteration_bounds = array<i64: 1>, scalar_prefetch = 0 : i64, scratch_operands = 0 : i64, tpu.core_type = #tpu.core_type<tc>, window_params = [{transform_indices = @transform_0, window_bounds = array<i64: 16, 64>}, {pipeline_mode = #tpu.pipeline_mode<synchronous>, transform_indices = @transform_1, window_bounds = array<i64: 1, 64>}, {pipeline_mode = #tpu.pipeline_mode<synchronous>, transform_indices = @transform_2, window_bounds = array<i64: 1, 64>}, {transform_indices = @transform_3, window_bounds = array<i64: 16, 64>}]} {
    %c0 = arith.constant 0 : index
    %c0_0 = arith.constant 0 : index
    %0 = vector.load %arg1[%c0, %c0_0] : memref<16x64xf32, #tpu.memory_space<vmem>>, vector<16x64xf32>
    %cst = arith.constant dense<0.000000e+00> : vector<16xf32>
    %1 = vector.multi_reduction <add>, %0, %cst [1] : vector<16x64xf32> to vector<16xf32>
    %2 = vector.shape_cast %1 : vector<16xf32> to vector<16x1xf32>
    %cst_1 = arith.constant 6.400000e+01 : f32
    %3 = vector.broadcast %cst_1 : f32 to vector<16x1xf32>
    %4 = arith.divf %2, %3 : vector<16x1xf32>
    %5 = vector.broadcast %4 : vector<16x1xf32> to vector<16x64xf32>
    %6 = arith.subf %0, %5 : vector<16x64xf32>
    %7 = arith.mulf %6, %6 : vector<16x64xf32>
    %cst_2 = arith.constant dense<0.000000e+00> : vector<16xf32>
    %8 = vector.multi_reduction <add>, %7, %cst_2 [1] : vector<16x64xf32> to vector<16xf32>
    %9 = vector.shape_cast %8 : vector<16xf32> to vector<16x1xf32>
    %cst_3 = arith.constant 6.400000e+01 : f32
    %10 = vector.broadcast %cst_3 : f32 to vector<16x1xf32>
    %11 = arith.divf %9, %10 : vector<16x1xf32>
    %12 = vector.broadcast %4 : vector<16x1xf32> to vector<16x64xf32>
    %13 = arith.subf %0, %12 : vector<16x64xf32>
    %cst_4 = arith.constant 1.000000e-07 : f32
    %14 = vector.broadcast %cst_4 : f32 to vector<16x1xf32>
    %15 = arith.addf %11, %14 : vector<16x1xf32>
    %16 = math.rsqrt %15 : vector<16x1xf32>
    %17 = vector.broadcast %16 : vector<16x1xf32> to vector<16x64xf32>
    %18 = arith.mulf %13, %17 : vector<16x64xf32>
    %c0_5 = arith.constant 0 : index
    %c0_6 = arith.constant 0 : index
    %19 = vector.load %arg2[%c0_5, %c0_6] : memref<1x64xf32, #tpu.memory_space<vmem>>, vector<1x64xf32>
    %20 = vector.broadcast %19 : vector<1x64xf32> to vector<16x64xf32>
    %21 = arith.mulf %20, %18 : vector<16x64xf32>
    %c0_7 = arith.constant 0 : index
    %c0_8 = arith.constant 0 : index
    %22 = vector.load %arg3[%c0_7, %c0_8] : memref<1x64xf32, #tpu.memory_space<vmem>>, vector<1x64xf32>
    %23 = vector.broadcast %22 : vector<1x64xf32> to vector<16x64xf32>
    %24 = arith.addf %21, %23 : vector<16x64xf32>
    %c0_9 = arith.constant 0 : index
    %c0_10 = arith.constant 0 : index
    %25 = vector.load %arg4[%c0_9, %c0_10] : memref<16x64xf32, #tpu.memory_space<vmem>>, vector<16x64xf32>
    tpu.vector_store %arg4[%c0_9, %c0_10], %24 {strides = array<i32>} : memref<16x64xf32, #tpu.memory_space<vmem>>, vector<16x64xf32>,
    return
  }
  func.func @transform_0(%arg0: i32) -> (i32, i32) {
    %c0_i32 = arith.constant 0 : i32
    %c0_i32_0 = arith.constant 0 : i32
    return %arg0, %c0_i32 : i32, i32
  }
  func.func @transform_1(%arg0: i32) -> (i32, i32) {
    %c0_i32 = arith.constant 0 : i32
    %c0_i32_0 = arith.constant 0 : i32
    %c0_i32_1 = arith.constant 0 : i32
    return %c0_i32, %c0_i32_0 : i32, i32
  }
  func.func @transform_2(%arg0: i32) -> (i32, i32) {
    %c0_i32 = arith.constant 0 : i32
    %c0_i32_0 = arith.constant 0 : i32
    %c0_i32_1 = arith.constant 0 : i32
    return %c0_i32, %c0_i32_0 : i32, i32
  }
  func.func @transform_3(%arg0: i32) -> (i32, i32) {
    %c0_i32 = arith.constant 0 : i32
    %c0_i32_0 = arith.constant 0 : i32
    return %arg0, %c0_i32 : i32, i32
  }
}

</mosaic_0001>

<bundles_post_ra>
// kernel: tpu_custom_call.1
= control target key start
LH: loop header
LB: loop body
LE: loop exit
PB: predicated region body
PF: predicated region fallthrough
CT: control target
= control target key end

     0   :  { %8 = vsyncpa [#allocation3], 0  ;;  %s198_s0 = inlined_call_operand.hbm [shape: f32[16,64], index: 0, kind: input, shape index: {}]   ;;  %s199_s1 = inlined_call_operand.vmem [shape: f32[1,64], index: 1, kind: input, shape index: {}]   ;;  %s200_s2 = inlined_call_operand.vmem [shape: f32[1,64], index: 2, kind: input, shape index: {}]   ;;  %s201_s3 = inlined_call_operand.hbm [shape: f32[16,64], index: 3, kind: output, shape index: {}]  }
   0x1   :  { %9 = vsyncpa [#allocation4], 0  ;;  %s150_s12 = smov [#allocation2]  }
   0x2   :  { %s15_s13 = sshll.u32 %s150_s12, 4  ;;  %s16_s13 = int_to_ptr.vmem [resolvable:$true] %s15_s13 }
   0x3   :  { %s114_s14 = scalar_lea.vmem %s16_s13, 256  ;;  %p119_p1 = scmp.lt.s32.totalorder %s16_s13, %s16_s13 }
   0x4   :  { %p115_p0 = scmp.ne.s32.totalorder %s16_s13, %s114_s14  ;;  %p120_p2 = scmp.lt.s32.totalorder %s114_s14, %s114_s14 }
   0x6   :  { %p121_p3 = por %p120_p2, %p119_p1 }
   0x8   :  { %p122_p4 = pnand %p121_p3, %p115_p0 }
   0xa   :  { %125 = shalt.err (!%p122_p4)
}
   0xb   :  { %s151_s15 = smov 128   ;;  %s152_s16 = smov 8  }
   0xc   :  { %21 = dma.hbm_to_vmem [thread:$0]  %s198_s0, 256, %s16_s13, [#allocation3], %s151_s15, %s151_s15, %s152_s16  }
   0xd   :  { %146 = dma.done.wait [#allocation3], 256  }
   0xe   :  { %147 = vsyncadd [#allocation3], 4294967040  ;;  %vm31_vm0 = vcmask 523264   ;;  %v29_v0 = vld [vmem:[#allocation2] sm:$0xff]  ;;  %v30_v1 = vld [vmem:[#allocation2 + $0x8] sm:$0xff]  ;;  %s153_s22 = smov [#allocation5]  }
   0xf   :  { %v32_v2 = vsel %vm31_vm0, %v29_v0, 0.0  ;;  %v35_v3 = vsel %vm31_vm0, %v30_v1, 0.0  ;;  %v96_v21 = vld [vmem:[%s199_s1] ss:$0 sm:$0xff]  ;;  %s84_s23 = sshll.u32 %s153_s22, 4  ;;  %s85_s23 = int_to_ptr.vmem [resolvable:$true] %s84_s23 }
  0x10   :  { %33 = vadd.xlane.f32.xlu0 %v32_v2  ;;  %v97_v23 = vld [vmem:[%s200_s2] ss:$0 sm:$0xff]  ;;  %s126_s24 = scalar_lea.vmem %s85_s23, 256  ;;  %p131_p6 = scmp.lt.s32.totalorder %s85_s23, %s85_s23 }
  0x11   :  { %p127_p5 = scmp.ne.s32.totalorder %s85_s23, %s126_s24  ;;  %p132_p7 = scmp.lt.s32.totalorder %s126_s24, %s126_s24 }
  0x13   :  { %p133_p8 = por %p132_p7, %p131_p6 }
  0x14   :  { %36 = vadd.xlane.f32.xlu0 %v35_v3 }
  0x15   :  { %p134_p9 = pnand %p133_p8, %p127_p5 }
  0x99   :  { %v34_v4 = vpop.xlane.xlu0 %33 }
  0x9a   :  { %v39_v5 = vmul.f32 0.015625, %v34_v4 }
  0x9c   :  { %v41_v6 = vsub.f32 %v29_v0, %v39_v5 }
  0x9d   :  { %v37_v7 = vpop.xlane.xlu0 %36 }
  0x9e   :  { %v40_v8 = vmul.f32 0.015625, %v37_v7  ;;  %v43_v9 = vmul.f32 %v41_v6, %v41_v6 }
  0xa0   :  { %v42_v10 = vsub.f32 %v30_v1, %v40_v8  ;;  %v45_v11 = vsel %vm31_vm0, %v43_v9, 0.0 }
  0xa1   :  { %46 = vadd.xlane.f32.xlu1 %v45_v11 }
  0xa2   :  { %v44_v12 = vmul.f32 %v42_v10, %v42_v10 }
  0xa4   :  { %v48_v13 = vsel %vm31_vm0, %v44_v12, 0.0 }
  0xa5   :  { %49 = vadd.xlane.f32.xlu1 %v48_v13 }
 0x12a   :  { %v47_v14 = vpop.xlane.xlu1 %46 }
 0x12b   :  { %v51_v15 = vmul.f32 0.015625, %v47_v14 }
 0x12d   :  { %v53_v16 = vadd.f32 1e-07, %v51_v15 }
 0x12e   :  { %v50_v17 = vpop.xlane.xlu1 %49 }
 0x12f   :  { %102 = vrsqrt.f32 %v53_v16  ;;  %v52_v18 = vmul.f32 0.015625, %v50_v17 }
 0x131   :  { %v54_v19 = vadd.f32 1e-07, %v52_v18 }
 0x133   :  { %104 = vrsqrt.f32 %v54_v19 }
 0x13c   :  { %v103_v20 = vpop.eup %102 }
 0x13d   :  { %v57_v22 = vmul.f32 %v103_v20, %v41_v6 }
 0x13f   :  { %v66_v24 = vmul.f32 %v96_v21, %v57_v22 }
 0x140   :  { %v105_v25 = vpop.eup %104 }
 0x141   :  { %v58_v26 = vmul.f32 %v105_v25, %v42_v10  ;;  %v75_v27 = vadd.f32 %v97_v23, %v66_v24 }
 0x143   :  { %v67_v28 = vmul.f32 %v96_v21, %v58_v26  ;;  %77 = vst.msk [vmem:[#allocation5] sm:$0xff] %vm31_vm0, %v75_v27 }
 0x145   :  { %v76_v29 = vadd.f32 %v97_v23, %v67_v28 }
 0x147   :  { %78 = vst.msk [vmem:[#allocation5 + $0x8] sm:$0xff] %vm31_vm0, %v76_v29 }
 0x148   :  { %137 = shalt.err (!%p134_p9)
}
 0x149   :  { %90 = dma.vmem_to_hbm [thread:$0]  %s85_s23, 256, %s201_s3, [#allocation4], %s151_s15, %s151_s15, %s152_s16  }
 0x14a   :  { %148 = dma.done.wait [#allocation4], 256  }
 0x14b   :  { %149 = vsyncadd [#allocation4], 4294967040 }
 0x14c   :  { %94 = vsyncpa [#allocation3], 1 }
 0x14d   :  { %95 = vsyncpa [#allocation4], 1 }

</bundles_post_ra>
